<compile_context>
chip_gen: v5e
topology: v5e:2x2
jax: 0.10.0
libtpu: 0.0.40
codegen_flags: <defaults>
</compile_context>

<pallas_src>
import functools

import jax
import jax.numpy as jnp
from jax.experimental import pallas as pl
from jax.experimental.pallas import tpu as pltpu

_LANE = 128


def _round_up(a, m):
    return ((a + m - 1) // m) * m


def _pick_tile(n_pad, candidates):
    for c in candidates:
        if c <= n_pad and n_pad % c == 0:
            return c
    return n_pad


def _vmem_limit_bytes():
    # Per-chip scoped VMEM limit with headroom (~48 MiB on v7x, ~96 MiB on
    # v5e/v6e) instead of hard-coding the full physical size.
    try:
        cap = int(pltpu.get_tpu_info().vmem_capacity_bytes)
    except Exception:
        cap = 128 * 1024 * 1024
    return (cap * 3) // 4


# ---------------------------------------------------------------------------
# Support kernel:  S_tile = act(H_tile @ W)   (computed exactly once per row)
# ---------------------------------------------------------------------------
def _support_kernel(h_ref, w_ref, s_ref, *, activate):
    s = jnp.dot(h_ref[...], w_ref[...], preferred_element_type=jnp.float32)
    if activate:
        s = jnp.tanh(s)
    s_ref[...] = s.astype(s_ref.dtype)  # bf16 producer-side cast


def _support(h, w_t, *, activate, tm, vmem_limit):
    n_pad, d_in = h.shape
    d_out = w_t.shape[1]
    kernel = functools.partial(_support_kernel, activate=activate)
    return pl.pallas_call(
        kernel,
        out_shape=jax.ShapeDtypeStruct((n_pad, d_out), jnp.bfloat16),
        grid=(n_pad // tm,),
        in_specs=[
            pl.BlockSpec((tm, d_in), lambda i: (i, 0)),    # H row tile
            pl.BlockSpec((d_in, d_out), lambda i: (0, 0)), # weight (in, out)
        ],
        out_specs=pl.BlockSpec((tm, d_out), lambda i: (i, 0)),
        compiler_params=pltpu.CompilerParams(
            dimension_semantics=("parallel",),
            vmem_limit_bytes=vmem_limit),
    )(h, w_t)


# ---------------------------------------------------------------------------
# Aggregation kernel:  out = adj @ S, K-tiled with f32 VMEM accumulator.
# ---------------------------------------------------------------------------
def _adj_spec(tm, tk, n_pad):
    index_map = lambda i, k: (i, k)
    if n_pad // tk >= 3:
        # Deeper buffering hides DMA latency once each step is a thin
        # HBM-bound adj_tile @ S matmul; only pays off with >= 3 K steps.
        return pl.BlockSpec((tm, tk), index_map, pipeline_mode=pl.Buffered(3))
    return pl.BlockSpec((tm, tk), index_map)


def _agg_kernel(adj_ref, s_ref, out_ref, acc_ref):
    k = pl.program_id(1)

    @pl.when(k == 0)
    def _():
        acc_ref[...] = jnp.zeros_like(acc_ref)

    acc_ref[...] += jnp.dot(adj_ref[...], s_ref[...],
                            preferred_element_type=jnp.float32)

    @pl.when(k == pl.num_programs(1) - 1)
    def _():
        out_ref[...] = acc_ref[...].astype(out_ref.dtype)


def _aggregate(adj, s, *, tm, tk, out_dtype, vmem_limit):
    n_pad = adj.shape[0]
    d_out = s.shape[1]
    return pl.pallas_call(
        _agg_kernel,
        out_shape=jax.ShapeDtypeStruct((n_pad, d_out), out_dtype),
        grid=(n_pad // tm, n_pad // tk),
        in_specs=[
            _adj_spec(tm, tk, n_pad),                       # adj (tm, tk) tile
            pl.BlockSpec((tk, d_out), lambda i, k: (k, 0)), # S K tile
        ],
        out_specs=pl.BlockSpec((tm, d_out), lambda i, k: (i, 0)),
        scratch_shapes=[pltpu.VMEM((tm, d_out), jnp.float32)],
        compiler_params=pltpu.CompilerParams(
            dimension_semantics=("parallel", "arbitrary"),
            vmem_limit_bytes=vmem_limit),
    )(adj, s)


# ---------------------------------------------------------------------------
# Fused final kernel:  z3 = adj @ S3 (K-tiled accumulate), then
#                      c  = softmax(z3 @ Wc + bc) on the last K step.
# ---------------------------------------------------------------------------
def _agg_cluster_kernel(adj_ref, s_ref, wc_ref, bc_ref, z_ref, c_ref, acc_ref):
    k = pl.program_id(1)

    @pl.when(k == 0)
    def _():
        acc_ref[...] = jnp.zeros_like(acc_ref)

    acc_ref[...] += jnp.dot(adj_ref[...], s_ref[...],
                            preferred_element_type=jnp.float32)

    @pl.when(k == pl.num_programs(1) - 1)
    def _():
        z = acc_ref[...]
        logits = jnp.dot(z.astype(wc_ref.dtype), wc_ref[...],
                         preferred_element_type=jnp.float32) + bc_ref[...]
        m = jnp.max(logits, axis=-1, keepdims=True)
        e = jnp.exp(logits - m)
        c = e * pl.reciprocal(jnp.sum(e, axis=-1, keepdims=True), approx=True)
        z_ref[...] = z.astype(z_ref.dtype)
        c_ref[...] = c.astype(c_ref.dtype)


def _aggregate_cluster(adj, s3, wc_t, bc, *, tm, tk, vmem_limit):
    n_pad = adj.shape[0]
    e3_p = s3.shape[1]
    nc_p = wc_t.shape[1]
    return pl.pallas_call(
        _agg_cluster_kernel,
        out_shape=(jax.ShapeDtypeStruct((n_pad, e3_p), jnp.float32),
                   jax.ShapeDtypeStruct((n_pad, nc_p), jnp.float32)),
        grid=(n_pad // tm, n_pad // tk),
        in_specs=[
            _adj_spec(tm, tk, n_pad),
            pl.BlockSpec((tk, e3_p), lambda i, k: (k, 0)),
            pl.BlockSpec((e3_p, nc_p), lambda i, k: (0, 0)),
            pl.BlockSpec((1, nc_p), lambda i, k: (0, 0)),
        ],
        out_specs=(
            pl.BlockSpec((tm, e3_p), lambda i, k: (i, 0)),
            pl.BlockSpec((tm, nc_p), lambda i, k: (i, 0)),
        ),
        scratch_shapes=[pltpu.VMEM((tm, e3_p), jnp.float32)],
        compiler_params=pltpu.CompilerParams(
            dimension_semantics=("parallel", "arbitrary"),
            vmem_limit_bytes=vmem_limit),
    )(adj, s3, wc_t, bc)


def igae_forward(x, adj, w1, w2, w3, wc, bc):
    """IGAE forward. Returns (z_igae (N, enc3) f32, c (N, n_clusters) f32)."""
    n, n_input = x.shape
    enc1, enc2, enc3 = w1.shape[0], w2.shape[0], w3.shape[0]
    n_clusters = wc.shape[0]

    vmem_limit = _vmem_limit_bytes()

    # Pad N to a multiple of 128 (lane-dense adj tiles, minimal dead rows);
    # row tile tm and contraction tile tk are multiples of 128 dividing n_pad.
    n_pad = _round_up(n, _LANE)
    tm = _pick_tile(n_pad, (256, 128))
    tk = _pick_tile(n_pad, (2048, 1024, 512, 256, 128))

    din_p = _round_up(n_input, _LANE)
    e1_p = _round_up(enc1, _LANE)
    e2_p = _round_up(enc2, _LANE)
    e3_p = _round_up(enc3, _LANE)
    nc_p = _round_up(n_clusters, _LANE)

    bf16 = jnp.bfloat16
    # Zero-pad + cast operands; pre-transpose weights to (in, out).
    # TODO(synk): for repeated forwards on large graphs, pad/cast adj once
    # outside this function instead of per call.
    xp = jnp.zeros((n_pad, din_p), bf16).at[:n, :n_input].set(x.astype(bf16))
    adjp = jnp.zeros((n_pad, n_pad), bf16).at[:n, :n].set(adj.astype(bf16))
    w1t = jnp.zeros((din_p, e1_p), bf16).at[:n_input, :enc1].set(w1.T.astype(bf16))
    w2t = jnp.zeros((e1_p, e2_p), bf16).at[:enc1, :enc2].set(w2.T.astype(bf16))
    w3t = jnp.zeros((e2_p, e3_p), bf16).at[:enc2, :enc3].set(w3.T.astype(bf16))
    wct = jnp.zeros((e3_p, nc_p), bf16).at[:enc3, :n_clusters].set(wc.T.astype(bf16))
    # Padded cluster-bias lanes get -1e9 so softmax maps them to exactly 0.
    bcp = jnp.full((1, nc_p), -1e9, jnp.float32).at[0, :n_clusters].set(
        bc.reshape(-1).astype(jnp.float32))

    # Layer 1: support once, then K-tiled aggregation.
    s1 = _support(xp, w1t, activate=True, tm=tm, vmem_limit=vmem_limit)
    z1 = _aggregate(adjp, s1, tm=tm, tk=tk, out_dtype=bf16, vmem_limit=vmem_limit)

    # Layer 2.
    s2 = _support(z1, w2t, activate=True, tm=tm, vmem_limit=vmem_limit)
    z2 = _aggregate(adjp, s2, tm=tm, tk=tk, out_dtype=bf16, vmem_limit=vmem_limit)

    # Layer 3 (no activation) fused with cluster Linear + Softmax.
    s3 = _support(z2, w3t, activate=False, tm=tm, vmem_limit=vmem_limit)
    z3_pad, c_pad = _aggregate_cluster(adjp, s3, wct, bcp,
                                       tm=tm, tk=tk, vmem_limit=vmem_limit)

    return z3_pad[:n, :enc3], c_pad[:n, :n_clusters]


# Pure-JAX f32 reference (mirrors the PyTorch forward).
def igae_reference(x, adj, w1, w2, w3, wc, bc):
    z1 = adj @ jnp.tanh(x @ w1.T)
    z2 = adj @ jnp.tanh(z1 @ w2.T)
    z3 = adj @ (z2 @ w3.T)
    logits = z3 @ wc.T + bc
    return z3, jax.nn.softmax(logits, axis=-1)


def xavier_uniform(key, out_f, in_f):
    limit = jnp.sqrt(6.0 / (in_f + out_f))
    return jax.random.uniform(key, (out_f, in_f), jnp.float32, -limit, limit)


if __name__ == "__main__":
    # small, deterministic config
    N = 8            # number of graph nodes
    n_input = 16
    gae_n_enc_1 = 32
    gae_n_enc_2 = 16
    gae_n_enc_3 = 8
    n_clusters = 4

    key = jax.random.PRNGKey(0)
    kx, kadj, k1, k2, k3, kc, kb = jax.random.split(key, 7)

    x = jax.random.normal(kx, (N, n_input), jnp.float32)
    # symmetric row-normalized adjacency-like matrix
    a = jax.random.uniform(kadj, (N, N), jnp.float32)
    a = 0.5 * (a + a.T) + jnp.eye(N, dtype=jnp.float32)
    adj = a / jnp.sum(a, axis=1, keepdims=True)

    # GNN weights (xavier uniform, PyTorch (out, in) convention)
    w1 = xavier_uniform(k1, gae_n_enc_1, n_input)
    w2 = xavier_uniform(k2, gae_n_enc_2, gae_n_enc_1)
    w3 = xavier_uniform(k3, gae_n_enc_3, gae_n_enc_2)
    wc = xavier_uniform(kc, n_clusters, gae_n_enc_3)
    bc = jax.random.uniform(kb, (1, n_clusters), jnp.float32, -0.1, 0.1)

    z_igae, c = igae_forward(x, adj, w1, w2, w3, wc, bc)
    jax.block_until_ready((z_igae, c))

    z_ref, c_ref = igae_reference(x, adj, w1, w2, w3, wc, bc)

    assert z_igae.shape == (N, gae_n_enc_3)
    assert c.shape == (N, n_clusters)
    # softmax rows sum to ~1 (approx reciprocal has ~2^-12 relative error)
    assert bool(jnp.allclose(jnp.sum(c, axis=-1), 1.0, atol=1e-2))
    # bf16 operands / f32 accumulation: loose tolerance vs f32 reference
    assert bool(jnp.allclose(z_igae, z_ref, atol=5e-2, rtol=5e-2))
    assert bool(jnp.allclose(c, c_ref, atol=5e-2, rtol=5e-2))
    print("KERNEL_OK")
</pallas_src>

<mosaic_0001>
module attributes {stable_mosaic.version = 11 : i64} {
  func.func @_support_kernel(%arg0: i32, %arg1: memref<128x128xbf16, #tpu.memory_space<vmem>>, %arg2: memref<128x128xbf16, #tpu.memory_space<vmem>>, %arg3: memref<128x128xbf16, #tpu.memory_space<vmem>>) attributes {dimension_semantics = [#tpu.dimension_semantics<parallel>], iteration_bounds = array<i64: 1>, scalar_prefetch = 0 : i64, scratch_operands = 0 : i64, tpu.core_type = #tpu.core_type<tc>, window_params = [{transform_indices = @transform_0, window_bounds = array<i64: 128, 128>}, {pipeline_mode = #tpu.pipeline_mode<synchronous>, transform_indices = @transform_1, window_bounds = array<i64: 128, 128>}, {transform_indices = @transform_2, window_bounds = array<i64: 128, 128>}]} {
    %c0 = arith.constant 0 : index
    %c0_0 = arith.constant 0 : index
    %0 = vector.load %arg1[%c0, %c0_0] : memref<128x128xbf16, #tpu.memory_space<vmem>>, vector<128x128xbf16>
    %c0_1 = arith.constant 0 : index
    %c0_2 = arith.constant 0 : index
    %1 = vector.load %arg2[%c0_1, %c0_2] : memref<128x128xbf16, #tpu.memory_space<vmem>>, vector<128x128xbf16>
    %cst = arith.constant dense<0.000000e+00> : vector<128x128xf32>
    %2 = tpu.matmul %0, %1, %cst {dimension_numbers = #tpu.dot_dimension_numbers<[1], [0], [0], [1], [0, 0, 1, 1], [], []>} : vector<128x128xbf16>, vector<128x128xbf16>, vector<128x128xf32> -> vector<128x128xf32>
    %3 = math.tanh %2 : vector<128x128xf32>
    %4 = arith.truncf %3 : vector<128x128xf32> to vector<128x128xbf16>
    %c0_3 = arith.constant 0 : index
    %c0_4 = arith.constant 0 : index
    %5 = vector.load %arg3[%c0_3, %c0_4] : memref<128x128xbf16, #tpu.memory_space<vmem>>, vector<128x128xbf16>
    tpu.vector_store %arg3[%c0_3, %c0_4], %4 {strides = array<i32>} : memref<128x128xbf16, #tpu.memory_space<vmem>>, vector<128x128xbf16>,
    return
  }
  func.func @transform_0(%arg0: i32) -> (i32, i32) {
    %c0_i32 = arith.constant 0 : i32
    %c0_i32_0 = arith.constant 0 : i32
    return %arg0, %c0_i32 : i32, i32
  }
  func.func @transform_1(%arg0: i32) -> (i32, i32) {
    %c0_i32 = arith.constant 0 : i32
    %c0_i32_0 = arith.constant 0 : i32
    %c0_i32_1 = arith.constant 0 : i32
    return %c0_i32, %c0_i32_0 : i32, i32
  }
  func.func @transform_2(%arg0: i32) -> (i32, i32) {
    %c0_i32 = arith.constant 0 : i32
    %c0_i32_0 = arith.constant 0 : i32
    return %arg0, %c0_i32 : i32, i32
  }
}

</mosaic_0001>

<bundles_post_ra>
// kernel: tpu_custom_call.1
= control target key start
LH: loop header
LB: loop body
LE: loop exit
PB: predicated region body
PF: predicated region fallthrough
CT: control target
= control target key end

     0   :  { %7 = vsyncpa [#allocation3], 0  ;;  %s593_s0 = inlined_call_operand.hbm [shape: bf16[128,128], index: 0, kind: input, shape index: {}]   ;;  %s594_s1 = inlined_call_operand.hbm [shape: bf16[128,128], index: 1, kind: input, shape index: {}]   ;;  %s595_s2 = inlined_call_operand.hbm [shape: bf16[128,128], index: 2, kind: output, shape index: {}]  }
   0x1   :  { %8 = vsyncpa [#allocation6], 0 }
   0x2   :  { %9 = vsyncpa [#allocation4], 0  ;;  %s14_s11 = sshll.u32 %s593_s0, 4  ;;  %s555_s12 = smov [#allocation2]   ;;  %s15_s11 = int_to_ptr.hbm [resolvable:$true] %s14_s11 }
   0x3   :  { %s16_s13 = sshll.u32 %s555_s12, 4  ;;  %s27_s16 = sshll.u32 %s594_s1, 4  ;;  %s17_s13 = int_to_ptr.vmem [resolvable:$true] %s16_s13  ;;  %s28_s16 = int_to_ptr.hbm [resolvable:$true] %s27_s16 }
   0x4   :  { %s556_s17 = smov 64   ;;  %s557_s18 = smov 4  }
   0x5   :  { %22 = dma.hbm_to_vmem [thread:$0]  %s15_s11, 1024, %s17_s13, [#allocation3], %s556_s17, %s556_s17, %s557_s18  }
   0x6   :  { %s558_s19 = smov [#allocation5]  }
   0x7   :  { %s29_s20 = sshll.u32 %s558_s19, 4  ;;  %s30_s20 = int_to_ptr.vmem [resolvable:$true] %s29_s20 }
   0x8   :  { %35 = dma.hbm_to_vmem [thread:$0]  %s28_s16, 1024, %s30_s20, [#allocation6], %s556_s17, %s556_s17, %s557_s18  }
   0x9   :  { %549 = dma.done.wait [#allocation3], 1024  }
   0xa   :  { %550 = vsyncadd [#allocation3], 4294966272 }
   0xb   :  { %551 = dma.done.wait [#allocation6], 1024  }
   0xc   :  { %552 = vsyncadd [#allocation6], 4294966272  ;;  %v368_v0 = vld [vmem:[#allocation5 + $0x38] sm:$0xff]  ;;  %v367_v1 = vld [vmem:[#allocation5 + $0x30] sm:$0xff]  ;;  %s559_s0 = smov [#allocation7]   ;;  %s275_s23 = sshll.u32 %s595_s2, 4  ;;  %s276_s23 = int_to_ptr.hbm [resolvable:$true] %s275_s23 }
   0xd   :  { %172 = vmatpush.bf16.msra.mxu0 %v368_v0  ;;  %416 = vmatpush.bf16.msra.mxu1 %v368_v0  ;;  %v366_v2 = vld [vmem:[#allocation5 + $0x28] sm:$0xff]  ;;  %v365_v3 = vld [vmem:[#allocation5 + $0x20] sm:$0xff]  ;;  %v364_v4 = vld [vmem:[#allocation5 + $0x18] sm:$0xff]  ;;  %s273_s1 = sshll.u32 %s559_s0, 4  ;;  %s274_s1 = int_to_ptr.vmem [resolvable:$true] %s273_s1 }
   0xe   :  { %417 = vmatpush.bf16.msra.mxu2 %v368_v0  ;;  %418 = vmatpush.bf16.msra.mxu3 %v368_v0  ;;  %v363_v5 = vld [vmem:[#allocation5 + $0x10] sm:$0xff]  ;;  %v362_v6 = vld [vmem:[#allocation5 + $0x8] sm:$0xff]  ;;  %v361_v7 = vld [vmem:[#allocation5] sm:$0xff] }
   0xf   :  { %v353_v8 = vld [vmem:[#allocation2] sm:$0xff]  ;;  %v355_v9 = vld [vmem:[#allocation2 + $0x10] sm:$0xff]  ;;  %v354_v12 = vld [vmem:[#allocation2 + $0x8] sm:$0xff] }
  0x10   :  { %v357_v10 = vld [vmem:[#allocation2 + $0x20] sm:$0xff]  ;;  %v359_v11 = vld [vmem:[#allocation2 + $0x30] sm:$0xff]  ;;  %v356_v13 = vld [vmem:[#allocation2 + $0x18] sm:$0xff] }
  0x11   :  { %173 = vmatpush.bf16.msra.mxu0 %v367_v1  ;;  %419 = vmatpush.bf16.msra.mxu1 %v367_v1  ;;  %v358_v14 = vld [vmem:[#allocation2 + $0x28] sm:$0xff]  ;;  %v360_v15 = vld [vmem:[#allocation2 + $0x38] sm:$0xff] }
  0x12   :  { %420 = vmatpush.bf16.msra.mxu2 %v367_v1  ;;  %421 = vmatpush.bf16.msra.mxu3 %v367_v1 }
  0x15   :  { %174 = vmatpush.bf16.msra.mxu0 %v366_v2  ;;  %422 = vmatpush.bf16.msra.mxu1 %v366_v2 }
  0x16   :  { %423 = vmatpush.bf16.msra.mxu2 %v366_v2  ;;  %424 = vmatpush.bf16.msra.mxu3 %v366_v2 }
  0x19   :  { %175 = vmatpush.bf16.msra.mxu0 %v365_v3  ;;  %425 = vmatpush.bf16.msra.mxu1 %v365_v3 }
  0x1a   :  { %426 = vmatpush.bf16.msra.mxu2 %v365_v3  ;;  %427 = vmatpush.bf16.msra.mxu3 %v365_v3 }
  0x1d   :  { %176 = vmatpush.bf16.msra.mxu0 %v364_v4  ;;  %428 = vmatpush.bf16.msra.mxu1 %v364_v4 }
  0x1e   :  { %429 = vmatpush.bf16.msra.mxu2 %v364_v4  ;;  %430 = vmatpush.bf16.msra.mxu3 %v364_v4 }
  0x21   :  { %177 = vmatpush.bf16.msra.mxu0 %v363_v5  ;;  %431 = vmatpush.bf16.msra.mxu1 %v363_v5 }
  0x22   :  { %432 = vmatpush.bf16.msra.mxu2 %v363_v5  ;;  %433 = vmatpush.bf16.msra.mxu3 %v363_v5 }
  0x25   :  { %178 = vmatpush.bf16.msra.mxu0 %v362_v6  ;;  %434 = vmatpush.bf16.msra.mxu1 %v362_v6 }
  0x26   :  { %435 = vmatpush.bf16.msra.mxu2 %v362_v6  ;;  %436 = vmatpush.bf16.msra.mxu3 %v362_v6 }
  0x29   :  { %179 = vmatpush.bf16.msra.mxu0 %v361_v7  ;;  %437 = vmatpush.bf16.msra.mxu1 %v361_v7 }
  0x2a   :  { %438 = vmatpush.bf16.msra.mxu2 %v361_v7  ;;  %439 = vmatpush.bf16.msra.mxu3 %v361_v7 }
  0x2c   :  { %180 = vmatmul.bf16.vlgmr.msra.gmra.mxu0 %v353_v8  ;;  %190 = vmatmul.bf16.vlgmr.msra.gmra.mxu1 %v355_v9 }
  0x2d   :  { %200 = vmatmul.bf16.vlgmr.msra.gmra.mxu2 %v357_v10  ;;  %210 = vmatmul.bf16.vlgmr.msra.gmra.mxu3 %v359_v11 }
  0x3c   :  { %185 = vmatmul.bf16.gmra.mxu0 %v354_v12  ;;  %195 = vmatmul.bf16.gmra.mxu1 %v356_v13 }
  0x3d   :  { %205 = vmatmul.bf16.gmra.mxu2 %v358_v14  ;;  %215 = vmatmul.bf16.gmra.mxu3 %v360_v15 }
  0xa9   :  { %v181_v16 = vpop.f32.mrf.mxu0  ;;  %v191_v17 = vpop.f32.mrf.mxu1 }
  0xaa   :  { %445 = vtanh.f32 %v181_v16 }
  0xab   :  { %447 = vtanh.f32 %v191_v17 }
  0xb0   :  { %v201_v18 = vpop.f32.mrf.mxu2  ;;  %v211_v19 = vpop.f32.mrf.mxu3 }
  0xb1   :  { %v183_v20 = vpop.f32.mrf.mxu0  ;;  %v193_v21 = vpop.f32.mrf.mxu1 }
  0xb2   :  { %449 = vtanh.f32 %v183_v20  ;;  %v446_v22 = vpop.eup %445 }
  0xb3   :  { %451 = vtanh.f32 %v193_v21  ;;  %v448_v23 = vpop.eup %447 }
  0xb4   :  { %453 = vtanh.f32 %v201_v18 }
  0xb5   :  { %455 = vtanh.f32 %v211_v19 }
  0xb8   :  { %v203_v24 = vpop.f32.mrf.mxu2  ;;  %v213_v25 = vpop.f32.mrf.mxu3 }
  0xb9   :  { %v450_v26 = vpop.eup %449  ;;  %457 = vtanh.f32 %v203_v24  ;;  %v186_v27 = vpop.f32.mrf.mxu0 }
  0xba   :  { %v196_v28 = vpop.f32.mrf.mxu1  ;;  %v452_v29 = vpop.eup %451  ;;  %v372_v30 = vpack.c.bf16 %v450_v26, %v446_v22  ;;  %459 = vtanh.f32 %v213_v25 }
  0xbb   :  { %v382_v31 = vpack.c.bf16 %v452_v29, %v448_v23  ;;  %v454_v32 = vpop.eup %453  ;;  %461 = vtanh.f32 %v186_v27 }
  0xbc   :  { %373 = vst [vmem:[#allocation7] sm:$0xff] %v372_v30   ;;  %v456_v33 = vpop.eup %455  ;;  %463 = vtanh.f32 %v196_v28 }
  0xbd   :  { %410 = vst [vmem:[#allocation7 + $0x10] sm:$0xff] %v382_v31  }
  0xbf   :  { %v458_v34 = vpop.eup %457 }
  0xc0   :  { %v460_v35 = vpop.eup %459  ;;  %v392_v36 = vpack.c.bf16 %v458_v34, %v454_v32  ;;  %v206_v37 = vpop.f32.mrf.mxu2 }
  0xc1   :  { %v216_v38 = vpop.f32.mrf.mxu3  ;;  %v402_v39 = vpack.c.bf16 %v460_v35, %v456_v33  ;;  %v188_v40 = vpop.f32.mrf.mxu0 }
  0xc2   :  { %v198_v41 = vpop.f32.mrf.mxu1  ;;  %412 = vst [vmem:[#allocation7 + $0x20] sm:$0xff] %v392_v36   ;;  %465 = vtanh.f32 %v188_v40  ;;  %v462_v42 = vpop.eup %461 }
  0xc3   :  { %414 = vst [vmem:[#allocation7 + $0x30] sm:$0xff] %v402_v39   ;;  %467 = vtanh.f32 %v198_v41  ;;  %v464_v43 = vpop.eup %463 }
  0xc4   :  { %469 = vtanh.f32 %v206_v37 }
  0xc5   :  { %471 = vtanh.f32 %v216_v38 }
  0xc8   :  { %v208_v44 = vpop.f32.mrf.mxu2  ;;  %v466_v46 = vpop.eup %465 }
  0xc9   :  { %v218_v45 = vpop.f32.mrf.mxu3  ;;  %473 = vtanh.f32 %v208_v44  ;;  %v468_v47 = vpop.eup %467  ;;  %v377_v48 = vpack.c.bf16 %v466_v46, %v462_v42 }
  0xca   :  { %475 = vtanh.f32 %v218_v45  ;;  %v387_v49 = vpack.c.bf16 %v468_v47, %v464_v43  ;;  %v470_v50 = vpop.eup %469 }
  0xcb   :  { %409 = vst [vmem:[#allocation7 + $0x8] sm:$0xff] %v377_v48   ;;  %v472_v51 = vpop.eup %471 }
  0xcc   :  { %411 = vst [vmem:[#allocation7 + $0x18] sm:$0xff] %v387_v49  }
  0xcf   :  { %v474_v52 = vpop.eup %473 }
  0xd0   :  { %v476_v53 = vpop.eup %475  ;;  %v397_v54 = vpack.c.bf16 %v474_v52, %v470_v50 }
  0xd1   :  { %v407_v55 = vpack.c.bf16 %v476_v53, %v472_v51 }
  0xd2   :  { %413 = vst [vmem:[#allocation7 + $0x28] sm:$0xff] %v397_v54  }
  0xd3   :  { %415 = vst [vmem:[#allocation7 + $0x38] sm:$0xff] %v407_v55  }
  0xd4   :  { %281 = dma.vmem_to_hbm [thread:$0]  %s274_s1, 1024, %s276_s23, [#allocation4], %s556_s17, %s556_s17, %s557_s18  }
  0xd5   :  { %553 = dma.done.wait [#allocation4], 1024  }
  0xd6   :  { %554 = vsyncadd [#allocation4], 4294966272 }
  0xd7   :  { %286 = vsyncpa [#allocation3], 1 }
  0xd8   :  { %287 = vsyncpa [#allocation6], 1 }
  0xd9   :  { %288 = vsyncpa [#allocation4], 1 }

</bundles_post_ra>
